<compile_context>
chip_gen: v7x
topology: tpu7x:2x2x1
jax: 0.10.0
libtpu: 0.0.40
codegen_flags: <defaults>
</compile_context>

<pallas_src>
import functools

import jax
import jax.numpy as jnp
from jax.experimental import pallas as pl
from jax.experimental.pallas import tpu as pltpu


def _round_up(x, m):
    return (x + m - 1) // m * m


def _mlp_kernel(x_ref, *refs, num_layers):
    """Fused MLP over one row tile.

    refs = (w0, b0, w1, b1, ..., w_{L-1}, b_{L-1}, o_ref)
      x_ref : (TM, K0p)    input dtype (f32 or bf16); cast to bf16 in-kernel
      w_l   : (K_lp, N_lp) bf16   (lane-padded, VMEM-resident across the grid)
      b_l   : (1, N_lp)    f32
      o_ref : (TM, N_{L-1}p) bf16
    """
    o_ref = refs[-1]
    wb = refs[:-1]
    h = x_ref[...].astype(jnp.bfloat16)            # in-kernel cast: no extra HBM pass
    for l in range(num_layers):                    # unrolled at trace time
        w_ref = wb[2 * l]
        b_ref = wb[2 * l + 1]
        acc = jnp.dot(h, w_ref[...], preferred_element_type=jnp.float32)
        acc = acc + b_ref[...]                     # f32 epilogue (bias)
        if l < num_layers - 1:
            h = jnp.maximum(acc, 0.0).astype(jnp.bfloat16)   # ReLU in f32, hand off bf16
        else:
            o_ref[...] = acc.astype(o_ref.dtype)


class MLPPallas:
    """Pallas implementation of the simple MLP / FFN (bf16 ops, f32 accum)."""

    def __init__(self, input_dim, hidden_dim, output_dim, num_layers, key):
        self.num_layers = num_layers
        self.input_dim = input_dim
        self.output_dim = output_dim
        h = [hidden_dim] * (num_layers - 1)
        in_dims = [input_dim] + h
        out_dims = h + [output_dim]
        # Lane-pad every feature dim to a multiple of 128.
        self.in_dims_p = [_round_up(d, 128) for d in in_dims]
        self.out_dims_p = [_round_up(d, 128) for d in out_dims]

        self.weights = []   # bf16, shape (K_lp, N_lp)
        self.biases = []    # f32,  shape (1, N_lp)
        for (n_in, n_out, n_in_p, n_out_p) in zip(
            in_dims, out_dims, self.in_dims_p, self.out_dims_p
        ):
            key, wk, bk = jax.random.split(key, 3)
            bound = 1.0 / float(n_in) ** 0.5
            # PyTorch default Linear init: U(-1/sqrt(fan_in), 1/sqrt(fan_in)).
            w = jax.random.uniform(
                wk, (n_in, n_out), jnp.float32, minval=-bound, maxval=bound
            )
            b = jax.random.uniform(
                bk, (n_out,), jnp.float32, minval=-bound, maxval=bound
            )
            # Zero padding keeps the math exact: padded input columns hit zero
            # weight rows; padded output columns get zero weight + zero bias.
            wp = jnp.zeros((n_in_p, n_out_p), jnp.float32)
            wp = wp.at[:n_in, :n_out].set(w)
            bp = jnp.zeros((1, n_out_p), jnp.float32)
            bp = bp.at[0, :n_out].set(b)
            self.weights.append(wp.astype(jnp.bfloat16))
            self.biases.append(bp)

    def __call__(self, x, *, tile_m=1024):
        # x: (..., input_dim)
        lead_shape = x.shape[:-1]
        K = x.shape[-1]
        assert K == self.input_dim
        x2d = x.reshape(-1, K)
        M = x2d.shape[0]

        if M == 0:  # empty batch: avoid a zero-size grid / divide-by-zero
            return jnp.zeros((*lead_shape, self.output_dim), jnp.bfloat16)

        K0p = self.in_dims_p[0]
        Nout_p = self.out_dims_p[-1]

        # --- Row tiling: pick the step count first (>= ~4 when M permits =>
        # pipelining + both TensorCores on v7x), then derive tm from M so row
        # padding stays a handful of sublanes, never ~tile_m.
        rows8 = pl.cdiv(M, 8)
        target_steps = 4                      # ~2 steps per TensorCore
        n_steps = max(pl.cdiv(M, tile_m), min(target_steps, rows8))
        tm = pl.cdiv(rows8, n_steps) * 8
        n_steps = pl.cdiv(M, tm)
        Mp = n_steps * tm

        # --- Only materialize a padded/cast copy of x when padding is
        # actually needed; otherwise the kernel reads x directly and casts to
        # bf16 in vregs (drops x HBM traffic from ~8 B/elem to 2-4 B/elem).
        if K == K0p and Mp == M:
            x_in = x2d
        else:
            x_in = jnp.zeros((Mp, K0p), jnp.bfloat16)
            x_in = x_in.at[:M, :K].set(x2d.astype(jnp.bfloat16))

        grid = (n_steps,)

        resident_bytes = sum(
            w.size * 2 + b.size * 4 for w, b in zip(self.weights, self.biases)
        )
        # Grid-invariant weights/biases are never re-fetched; single-buffer
        # them when their footprint is big enough to matter for VMEM (v7x has
        # only 64 MiB).  Small DETR-sized weights keep the default path.
        single_buffer_weights = resident_bytes > (8 << 20)
        # TODO(synk): for hidden_dim >= ~2048 add a K-tiled grid axis with an
        # f32 accumulator instead of keeping whole weights VMEM-resident.

        in_specs = [pl.BlockSpec((tm, K0p), lambda i: (i, 0))]
        args = [x_in]
        for w, b in zip(self.weights, self.biases):
            if single_buffer_weights:
                in_specs.append(pl.BlockSpec(w.shape, lambda i: (0, 0),
                                             pipeline_mode=pl.Buffered(1)))
                in_specs.append(pl.BlockSpec(b.shape, lambda i: (0, 0),
                                             pipeline_mode=pl.Buffered(1)))
            else:
                in_specs.append(pl.BlockSpec(w.shape, lambda i: (0, 0)))
                in_specs.append(pl.BlockSpec(b.shape, lambda i: (0, 0)))
            args.append(w)
            args.append(b)

        out_spec = pl.BlockSpec((tm, Nout_p), lambda i: (i, 0))

        # --- Explicit VMEM budget: resident weights (x1 or x2 buffers) +
        # double-buffered x/out tiles + live f32/bf16 activation tiles.
        wb_bufs = 1 if single_buffer_weights else 2
        max_np = max(self.out_dims_p)
        vmem_bytes = (
            wb_bufs * resident_bytes
            + 2 * tm * K0p * x_in.dtype.itemsize
            + 2 * tm * Nout_p * 2
            + tm * max_np * (4 + 2)          # f32 acc + bf16 hand-off
            + (4 << 20)                      # headroom
        )
        vmem_limit = int(min(max(vmem_bytes, 32 << 20), 64 << 20))

        flops = 2 * Mp * sum(int(w.shape[0]) * int(w.shape[1]) for w in self.weights)
        bytes_accessed = int(
            x_in.size * x_in.dtype.itemsize
            + resident_bytes
            + Mp * Nout_p * 2                # bf16 output
        )

        kernel = functools.partial(_mlp_kernel, num_layers=self.num_layers)
        out = pl.pallas_call(
            kernel,
            out_shape=jax.ShapeDtypeStruct((Mp, Nout_p), jnp.bfloat16),
            grid=grid,
            in_specs=in_specs,
            out_specs=out_spec,
            compiler_params=pltpu.CompilerParams(
                dimension_semantics=("parallel",),
                vmem_limit_bytes=vmem_limit,
            ),
            cost_estimate=pl.CostEstimate(
                flops=flops, transcendentals=0, bytes_accessed=bytes_accessed
            ),
        )(*args)

        # NOTE: keep this slice inside the caller's jit (see __main__) so it
        # fuses with the consumer instead of becoming a standalone HBM pass
        # over the padded (Mp, 128) output.
        out = out[:M, : self.output_dim]
        return out.reshape(*lead_shape, self.output_dim)


def _reference_mlp(mlp, x):
    """Plain-JAX reference using the same bf16 params / f32 accumulation."""
    x2d = x.reshape(-1, x.shape[-1])
    K0p = mlp.in_dims_p[0]
    h = jnp.zeros((x2d.shape[0], K0p), jnp.bfloat16)
    h = h.at[:, : x.shape[-1]].set(x2d.astype(jnp.bfloat16))
    y = None
    for i, (w, b) in enumerate(zip(mlp.weights, mlp.biases)):
        y = jnp.dot(h, w, preferred_element_type=jnp.float32) + b
        if i < mlp.num_layers - 1:
            y = jnp.maximum(y, 0.0)
            h = y.astype(jnp.bfloat16)
    out = y[:, : mlp.output_dim]
    return out.reshape(*x.shape[:-1], mlp.output_dim)


if __name__ == "__main__":
    key = jax.random.PRNGKey(0)
    key, xkey, pkey, x2key, p2key = jax.random.split(key, 5)

    # --- Small DETR-like config (exercises the lane-padding path: 32 -> 128).
    batch, seq = 2, 8
    input_dim, hidden_dim, output_dim, num_layers = 32, 32, 4, 3
    x = jax.random.normal(xkey, (batch, seq, input_dim), jnp.float32)
    mlp = MLPPallas(input_dim, hidden_dim, output_dim, num_layers, pkey)

    fwd = jax.jit(lambda xx: mlp(xx))    # slice fuses with the consumer
    out = jax.block_until_ready(fwd(x))
    ref = _reference_mlp(mlp, x)
    assert out.shape == (batch, seq, output_dim)
    err = float(jnp.max(jnp.abs(out.astype(jnp.float32) - ref)))
    assert jnp.allclose(out.astype(jnp.float32), ref, atol=2e-2, rtol=2e-2), err

    # --- 128-aligned config: exercises the no-pad fast path (x passed to the
    # kernel directly as f32, cast to bf16 in-kernel).
    x2 = jax.random.normal(x2key, (2, 8, 128), jnp.float32)
    mlp2 = MLPPallas(128, 128, 4, 2, p2key)
    fwd2 = jax.jit(lambda xx: mlp2(xx))
    out2 = jax.block_until_ready(fwd2(x2))
    ref2 = _reference_mlp(mlp2, x2)
    assert out2.shape == (2, 8, 4)
    err2 = float(jnp.max(jnp.abs(out2.astype(jnp.float32) - ref2)))
    assert jnp.allclose(out2.astype(jnp.float32), ref2, atol=2e-2, rtol=2e-2), err2

    print("KERNEL_OK")
</pallas_src>

<mosaic_0001>
module attributes {stable_mosaic.version = 11 : i64} {
  func.func @_mlp_kernel(%arg0: i32, %arg1: memref<8x128xbf16, #tpu.memory_space<vmem>>, %arg2: memref<128x128xbf16, #tpu.memory_space<vmem>>, %arg3: memref<1x128xf32, #tpu.memory_space<vmem>>, %arg4: memref<128x128xbf16, #tpu.memory_space<vmem>>, %arg5: memref<1x128xf32, #tpu.memory_space<vmem>>, %arg6: memref<128x128xbf16, #tpu.memory_space<vmem>>, %arg7: memref<1x128xf32, #tpu.memory_space<vmem>>, %arg8: memref<8x128xbf16, #tpu.memory_space<vmem>>) attributes {dimension_semantics = [#tpu.dimension_semantics<parallel>], iteration_bounds = array<i64: 2>, scalar_prefetch = 0 : i64, scratch_operands = 0 : i64, tpu.core_type = #tpu.core_type<tc>, window_params = [{transform_indices = @transform_0, window_bounds = array<i64: 8, 128>}, {pipeline_mode = #tpu.pipeline_mode<synchronous>, transform_indices = @transform_1, window_bounds = array<i64: 128, 128>}, {pipeline_mode = #tpu.pipeline_mode<synchronous>, transform_indices = @transform_2, window_bounds = array<i64: 1, 128>}, {pipeline_mode = #tpu.pipeline_mode<synchronous>, transform_indices = @transform_3, window_bounds = array<i64: 128, 128>}, {pipeline_mode = #tpu.pipeline_mode<synchronous>, transform_indices = @transform_4, window_bounds = array<i64: 1, 128>}, {pipeline_mode = #tpu.pipeline_mode<synchronous>, transform_indices = @transform_5, window_bounds = array<i64: 128, 128>}, {pipeline_mode = #tpu.pipeline_mode<synchronous>, transform_indices = @transform_6, window_bounds = array<i64: 1, 128>}, {transform_indices = @transform_7, window_bounds = array<i64: 8, 128>}]} {
    %c0 = arith.constant 0 : index
    %c0_0 = arith.constant 0 : index
    %0 = vector.load %arg1[%c0, %c0_0] : memref<8x128xbf16, #tpu.memory_space<vmem>>, vector<8x128xbf16>
    %c0_1 = arith.constant 0 : index
    %c0_2 = arith.constant 0 : index
    %1 = vector.load %arg2[%c0_1, %c0_2] : memref<128x128xbf16, #tpu.memory_space<vmem>>, vector<128x128xbf16>
    %cst = arith.constant dense<0.000000e+00> : vector<8x128xf32>
    %2 = tpu.matmul %0, %1, %cst {dimension_numbers = #tpu.dot_dimension_numbers<[1], [0], [0], [1], [0, 0, 1, 1], [], []>} : vector<8x128xbf16>, vector<128x128xbf16>, vector<8x128xf32> -> vector<8x128xf32>
    %c0_3 = arith.constant 0 : index
    %c0_4 = arith.constant 0 : index
    %3 = vector.load %arg3[%c0_3, %c0_4] : memref<1x128xf32, #tpu.memory_space<vmem>>, vector<1x128xf32>
    %4 = vector.broadcast %3 : vector<1x128xf32> to vector<8x128xf32>
    %5 = arith.addf %2, %4 : vector<8x128xf32>
    %cst_5 = arith.constant 0.000000e+00 : f32
    %6 = vector.broadcast %cst_5 : f32 to vector<8x128xf32>
    %7 = arith.maximumf %5, %6 : vector<8x128xf32>
    %8 = arith.truncf %7 : vector<8x128xf32> to vector<8x128xbf16>
    %c0_6 = arith.constant 0 : index
    %c0_7 = arith.constant 0 : index
    %9 = vector.load %arg4[%c0_6, %c0_7] : memref<128x128xbf16, #tpu.memory_space<vmem>>, vector<128x128xbf16>
    %cst_8 = arith.constant dense<0.000000e+00> : vector<8x128xf32>
    %10 = tpu.matmul %8, %9, %cst_8 {dimension_numbers = #tpu.dot_dimension_numbers<[1], [0], [0], [1], [0, 0, 1, 1], [], []>} : vector<8x128xbf16>, vector<128x128xbf16>, vector<8x128xf32> -> vector<8x128xf32>
    %c0_9 = arith.constant 0 : index
    %c0_10 = arith.constant 0 : index
    %11 = vector.load %arg5[%c0_9, %c0_10] : memref<1x128xf32, #tpu.memory_space<vmem>>, vector<1x128xf32>
    %12 = vector.broadcast %11 : vector<1x128xf32> to vector<8x128xf32>
    %13 = arith.addf %10, %12 : vector<8x128xf32>
    %cst_11 = arith.constant 0.000000e+00 : f32
    %14 = vector.broadcast %cst_11 : f32 to vector<8x128xf32>
    %15 = arith.maximumf %13, %14 : vector<8x128xf32>
    %16 = arith.truncf %15 : vector<8x128xf32> to vector<8x128xbf16>
    %c0_12 = arith.constant 0 : index
    %c0_13 = arith.constant 0 : index
    %17 = vector.load %arg6[%c0_12, %c0_13] : memref<128x128xbf16, #tpu.memory_space<vmem>>, vector<128x128xbf16>
    %cst_14 = arith.constant dense<0.000000e+00> : vector<8x128xf32>
    %18 = tpu.matmul %16, %17, %cst_14 {dimension_numbers = #tpu.dot_dimension_numbers<[1], [0], [0], [1], [0, 0, 1, 1], [], []>} : vector<8x128xbf16>, vector<128x128xbf16>, vector<8x128xf32> -> vector<8x128xf32>
    %c0_15 = arith.constant 0 : index
    %c0_16 = arith.constant 0 : index
    %19 = vector.load %arg7[%c0_15, %c0_16] : memref<1x128xf32, #tpu.memory_space<vmem>>, vector<1x128xf32>
    %20 = vector.broadcast %19 : vector<1x128xf32> to vector<8x128xf32>
    %21 = arith.addf %18, %20 : vector<8x128xf32>
    %22 = arith.truncf %21 : vector<8x128xf32> to vector<8x128xbf16>
    %c0_17 = arith.constant 0 : index
    %c0_18 = arith.constant 0 : index
    %23 = vector.load %arg8[%c0_17, %c0_18] : memref<8x128xbf16, #tpu.memory_space<vmem>>, vector<8x128xbf16>
    tpu.vector_store %arg8[%c0_17, %c0_18], %22 {strides = array<i32>} : memref<8x128xbf16, #tpu.memory_space<vmem>>, vector<8x128xbf16>,
    return
  }
  func.func @transform_0(%arg0: i32) -> (i32, i32) {
    %c0_i32 = arith.constant 0 : i32
    %c0_i32_0 = arith.constant 0 : i32
    return %arg0, %c0_i32 : i32, i32
  }
  func.func @transform_1(%arg0: i32) -> (i32, i32) {
    %c0_i32 = arith.constant 0 : i32
    %c0_i32_0 = arith.constant 0 : i32
    %c0_i32_1 = arith.constant 0 : i32
    return %c0_i32, %c0_i32_0 : i32, i32
  }
  func.func @transform_2(%arg0: i32) -> (i32, i32) {
    %c0_i32 = arith.constant 0 : i32
    %c0_i32_0 = arith.constant 0 : i32
    %c0_i32_1 = arith.constant 0 : i32
    return %c0_i32, %c0_i32_0 : i32, i32
  }
  func.func @transform_3(%arg0: i32) -> (i32, i32) {
    %c0_i32 = arith.constant 0 : i32
    %c0_i32_0 = arith.constant 0 : i32
    %c0_i32_1 = arith.constant 0 : i32
    return %c0_i32, %c0_i32_0 : i32, i32
  }
  func.func @transform_4(%arg0: i32) -> (i32, i32) {
    %c0_i32 = arith.constant 0 : i32
    %c0_i32_0 = arith.constant 0 : i32
    %c0_i32_1 = arith.constant 0 : i32
    return %c0_i32, %c0_i32_0 : i32, i32
  }
  func.func @transform_5(%arg0: i32) -> (i32, i32) {
    %c0_i32 = arith.constant 0 : i32
    %c0_i32_0 = arith.constant 0 : i32
    %c0_i32_1 = arith.constant 0 : i32
    return %c0_i32, %c0_i32_0 : i32, i32
  }
  func.func @transform_6(%arg0: i32) -> (i32, i32) {
    %c0_i32 = arith.constant 0 : i32
    %c0_i32_0 = arith.constant 0 : i32
    %c0_i32_1 = arith.constant 0 : i32
    return %c0_i32, %c0_i32_0 : i32, i32
  }
  func.func @transform_7(%arg0: i32) -> (i32, i32) {
    %c0_i32 = arith.constant 0 : i32
    %c0_i32_0 = arith.constant 0 : i32
    return %arg0, %c0_i32 : i32, i32
  }
}

</mosaic_0001>

<bundles_post_ra>
// kernel: _lambda_.1
= control target key start
LH: loop header
LB: loop body
LE: loop exit
PB: predicated region body
PF: predicated region fallthrough
CT: control target
= control target key end

     0   :  { %12 = vsyncpa [#allocation3], 0  ;;  %s1185_s0 = inlined_call_operand.vmem [shape: bf16[16,128], index: 0, kind: input, shape index: {}]   ;;  %s1186_s1 = inlined_call_operand.hbm [shape: bf16[128,128], index: 1, kind: input, shape index: {}]   ;;  %s1187_s2 = inlined_call_operand.vmem [shape: f32[1,128], index: 2, kind: input, shape index: {}]   ;;  %s1188_s3 = inlined_call_operand.hbm [shape: bf16[128,128], index: 3, kind: input, shape index: {}]   ;;  %s1189_s4 = inlined_call_operand.vmem [shape: f32[1,128], index: 4, kind: input, shape index: {}]   ;;  %s1190_s5 = inlined_call_operand.vmem [shape: bf16[128,128], index: 5, kind: input, shape index: {}]   ;;  %s1191_s6 = inlined_call_operand.vmem [shape: f32[1,128], index: 6, kind: input, shape index: {}]   ;;  %s1192_s7 = inlined_call_operand.vmem [shape: bf16[16,128], index: 7, kind: output, shape index: {}]  }
   0x1   :  { %13 = vsyncpa [#allocation5], 0  ;;  %s1022_s24 = smov 0  }
   0x2 LB: > { %s1028_s25 = sadd.s32 4294967295, %s974_s24   ;;  %p722_p0 = scmp.ge.s32.totalorder %s974_s24, 1  ;;  %s974_s24 = sphi %s1022_s24, %s19_s24  }
   0x3   : > { %p202_p1 = scmp.lt.s32.totalorder %s974_s24, 3  ;;  %s976_s26 = smov [#allocation2]  }
   0x4   : > { %s214_s27 = sshll.u32 %s976_s26, 4  ;;  %p1193_p3 = scmp.eq.s32.totalorder %s1028_s25, 0  ;;  %s215_s27 = int_to_ptr.vmem [resolvable:$true] %s214_s27 }
   0x5   : > { %p1032_p2 = pnand %p722_p0, %p202_p1  ;;  %s977_s29 = smov [#allocation4]  }
   0x6   : > { %s230_s30 = sshll.u32 %s977_s29, 4  ;;  %s904_s11 = scalar_lea.hbm %s1186_s1, 1024  ;;  %s1045_s30 = int_to_ptr.vmem [resolvable:$true] %s230_s30 }
   0x7   : > { %s1195_s28 = scalar_select %p1032_p2, 1, 0 }
   0x8   : > { %p855_p4 = pneg %p1032_p2  ;;  %p905_p6 = scmp.ne.s32.totalorder %s1186_s1, %s904_s11 }
   0x9   : > { %p911_p10 = scmp.lt.u32.totalorder %s904_s11, %s1186_s1 }
   0xa   : > { %p1041_p5 = pnand %p1193_p3, %p855_p4 }
   0xc   : > { %p906_p7 = pneg %p1041_p5 }
   0xe   : > { %p907_p8 = pnand %p906_p7, %p905_p6 }
  0x10   : > { %p908_p9 = pneg %p907_p8 }
  0x12   : > { %p913_p11 = pnand %p911_p10, %p908_p9 }
  0x14   : > { %916 = shalt.err (!%p913_p11)
}
  0x15   : > { %s917_s16 = scalar_lea.vmem %s215_s27, 1024  ;;  %p925_p1 = scmp.lt.s32.totalorder %s215_s27, %s215_s27 }
  0x16   : > { %p918_p12 = scmp.ne.s32.totalorder %s215_s27, %s917_s16  ;;  %p926_p4 = scmp.lt.s32.totalorder %s917_s16, %s917_s16 }
  0x18   : > { %p920_p13 = pnand %p918_p12, %p906_p7  ;;  %p927_p3 = por %p926_p4, %p925_p1 }
  0x1a   : > { %p921_p0 = pneg %p920_p13 }
  0x1c   : > { %p928_p2 = pnand %p927_p3, %p921_p0 }
  0x1e   : > { %931 = shalt.err (!%p928_p2)
}
  0x1f   : > { %s978_s17 = smov 64   ;;  %s979_s18 = smov 4  }
  0x20   : > { %858 = dma.hbm_to_vmem [thread:$0]  (!%p1041_p5), %s1186_s1, 1024, %s215_s27, [#allocation3], %s978_s17, %s978_s17, %s979_s18  }
  0x21   : > { %s932_s23 = scalar_lea.hbm %s1188_s3, 1024 }
  0x22   : > { %p933_p6 = scmp.ne.s32.totalorder %s1188_s3, %s932_s23  ;;  %p939_p8 = scmp.lt.u32.totalorder %s932_s23, %s1188_s3 }
  0x24   : > { %p935_p2 = pnand %p933_p6, %p906_p7 }
  0x26   : > { %p936_p3 = pneg %p935_p2 }
  0x28   : > { %p941_p9 = pnand %p939_p8, %p936_p3 }
  0x2a   : > { %944 = shalt.err (!%p941_p9)
}
  0x2b   : > { %s945_s27 = scalar_lea.vmem %s1045_s30, 1024  ;;  %p953_p13 = scmp.lt.s32.totalorder %s1045_s30, %s1045_s30 }
  0x2c   : > { %p946_p10 = scmp.ne.s32.totalorder %s1045_s30, %s945_s27  ;;  %p954_p0 = scmp.lt.s32.totalorder %s945_s27, %s945_s27 }
  0x2e   : > { %p948_p11 = pnand %p946_p10, %p906_p7  ;;  %p955_p1 = por %p954_p0, %p953_p13 }
  0x30   : > { %p949_p12 = pneg %p948_p11 }
  0x32   : > { %p956_p4 = pnand %p955_p1, %p949_p12 }
  0x34   : > { %959 = shalt.err (!%p956_p4)
}
  0x35   : > { %861 = dma.hbm_to_vmem [thread:$0]  (!%p1041_p5), %s1188_s3, 1024, %s1045_s30, [#allocation5], %s978_s17, %s978_s17, %s979_s18  }
  0x36   : > { %p1197_p6 = scmp.ne.s32.totalorder %s1195_s28, 0 }
  0x37   : > { %p1198_p2 = scmp.eq.s32.totalorder (!%p1197_p6), %s1028_s25, 0 }
  0x38   : > { %262 = sbr.rel (%p1197_p6) target bundleno = 754 (0x2f2), region = 48 }
  0x3f   : > { %965 = dma.done.wait (%p1198_p2), [#allocation3], 1024   ;;  %p1199_p7 = pmov %p1198_p2 }
  0x40   : > { %p1200_p3 = pmov %p1198_p2 }
  0x41   : > { %967 = vsyncadd (%p1199_p7), [#allocation3], 4294966272 }
  0x42   : > { %969 = dma.done.wait (%p1200_p3), [#allocation5], 1024   ;;  %p1201_p8 = pmov %p1198_p2 }
  0x43   : > { %v980_v0 = vmov 0.0   ;;  %vm981_vm0 = vmmov 0   ;;  %v880_v1 = vld [vmem:[#allocation2] sm:$0xff]   ;;  %v881_v2 = vld [vmem:[#allocation2 + $0x8] sm:$0xff]   ;;  %v882_v3 = vld [vmem:[#allocation2 + $0x10] sm:$0xff]   ;;  %p296_p5 = scmp.lt.s32.totalorder %s1028_s25, 1 }
  0x44   : > { %971 = vsyncadd (%p1201_p8), [#allocation5], 4294966272  ;;  %787 = vmatprep.subr.bf16.mxu0 %v980_v0  ;;  %803 = vmatprep.mubr.msk.bf16.mxu0 %vm981_vm0, %v980_v0  ;;  %v888_v4 = vld [vmem:[#allocation4] sm:$0xff]   ;;  %v883_v5 = vld [vmem:[#allocation2 + $0x18] sm:$0xff]  }
  0x45   : > { %807 = vmatprep.subr.bf16.mxu1 %v980_v0  ;;  %823 = vmatprep.mubr.msk.bf16.mxu1 %vm981_vm0, %v980_v0  ;;  %v889_v6 = vld [vmem:[#allocation4 + $0x8] sm:$0xff]   ;;  %v884_v7 = vld [vmem:[#allocation2 + $0x20] sm:$0xff]   ;;  %s1203_s25 = smov (!%p296_p5, %s1028_s25), 1  ;;  %v890_v8 = vld [vmem:[#allocation4 + $0x10] sm:$0xff]  }
  0x46   : > { %788 = vmatpush3.bf16.msra.mxu0 %v880_v1  ;;  %808 = vmatpush3.bf16.msra.mxu1 %v888_v4  ;;  %v885_v9 = vld [vmem:[#allocation2 + $0x28] sm:$0xff]   ;;  %v891_v10 = vld [vmem:[#allocation4 + $0x18] sm:$0xff]   ;;  %v886_v11 = vld [vmem:[#allocation2 + $0x30] sm:$0xff]   ;;  %s729_s28 = sshll.u32 %s1203_s25, 2 }
  0x47   : > { %789 = vmatprep.subr.bf16.mxu0 %v980_v0  ;;  %809 = vmatprep.subr.bf16.mxu1 %v980_v0  ;;  %v892_v12 = vld [vmem:[#allocation4 + $0x20] sm:$0xff]   ;;  %v887_v13 = vld [vmem:[#allocation2 + $0x38] sm:$0xff]   ;;  %s299_s13 = scalar_lea.vmem %s1185_s0, %s729_s28  ;;  %v893_v14 = vld [vmem:[#allocation4 + $0x28] sm:$0xff]   ;;  %s303_s18 = scalar_lea.vmem %s1192_s7, %s729_s28 }
  0x48   : > { %v305_v15 = vld [vmem:[%s299_s13] sm:$0xf]  ;;  %v894_v16 = vld [vmem:[#allocation4 + $0x30] sm:$0xff]   ;;  %v895_v17 = vld [vmem:[#allocation4 + $0x38] sm:$0xff]  }
  0x49   : > { %v896_v18 = vld [vmem:[%s1190_s5] sm:$0xff]   ;;  %v897_v19 = vld [vmem:[%s1190_s5 + $0x8] sm:$0xff]   ;;  %v898_v20 = vld [vmem:[%s1190_s5 + $0x10] sm:$0xff]  }
  0x4a   : > { %790 = vmatpush3.bf16.msra.mxu0 %v881_v2  ;;  %810 = vmatpush3.bf16.msra.mxu1 %v889_v6  ;;  %v899_v21 = vld [vmem:[%s1190_s5 + $0x18] sm:$0xff]   ;;  %v900_v22 = vld [vmem:[%s1190_s5 + $0x20] sm:$0xff]   ;;  %v901_v23 = vld [vmem:[%s1190_s5 + $0x28] sm:$0xff]  }
  0x4b   : > { %791 = vmatprep.subr.bf16.mxu0 %v980_v0  ;;  %811 = vmatprep.subr.bf16.mxu1 %v980_v0  ;;  %v731_v24 = vld [vmem:[%s1187_s2] ss:$0 sm:$0xff]  ;;  %v902_v32 = vld [vmem:[%s1190_s5 + $0x30] sm:$0xff]   ;;  %v903_v33 = vld [vmem:[%s1190_s5 + $0x38] sm:$0xff]  }
  0x4c   : > { %v740_v34 = vld [vmem:[%s1189_s4] ss:$0 sm:$0xff] }
  0x4d   : > { %v749_v42 = vld [vmem:[%s1191_s6] ss:$0 sm:$0xff] }
  0x4e   : > { %792 = vmatpush3.bf16.msra.mxu0 %v882_v3  ;;  %812 = vmatpush3.bf16.msra.mxu1 %v890_v8 }
  0x4f   : > { %793 = vmatprep.subr.bf16.mxu0 %v980_v0  ;;  %813 = vmatprep.subr.bf16.mxu1 %v980_v0 }
  0x52   : > { %794 = vmatpush3.bf16.msra.mxu0 %v883_v5  ;;  %814 = vmatpush3.bf16.msra.mxu1 %v891_v10 }
  0x53   : > { %795 = vmatprep.subr.bf16.mxu0 %v980_v0  ;;  %815 = vmatprep.subr.bf16.mxu1 %v980_v0 }
  0x56   : > { %796 = vmatpush3.bf16.msra.mxu0 %v884_v7  ;;  %816 = vmatpush3.bf16.msra.mxu1 %v892_v12 }
  0x57   : > { %797 = vmatprep.subr.bf16.mxu0 %v980_v0  ;;  %817 = vmatprep.subr.bf16.mxu1 %v980_v0 }
  0x5a   : > { %798 = vmatpush3.bf16.msra.mxu0 %v885_v9  ;;  %818 = vmatpush3.bf16.msra.mxu1 %v893_v14 }
  0x5b   : > { %799 = vmatprep.subr.bf16.mxu0 %v980_v0  ;;  %819 = vmatprep.subr.bf16.mxu1 %v980_v0 }
  0x5e   : > { %800 = vmatpush3.bf16.msra.mxu0 %v886_v11  ;;  %820 = vmatpush3.bf16.msra.mxu1 %v894_v16 }
  0x5f   : > { %801 = vmatprep.subr.bf16.mxu0 %v980_v0  ;;  %821 = vmatprep.subr.bf16.mxu1 %v980_v0 }
  0x62   : > { %802 = vmatpush3.bf16.msra.mxu0 %v887_v13  ;;  %822 = vmatpush3.bf16.msra.mxu1 %v895_v17 }
  0x63   : > { %827 = vmatprep.subr.bf16.mxu0 %v980_v0 }
  0x65   : > { %804 = vmatmul.mubr.bf16.vlgmr.msra.gmra.mrb[0].mxu0 %v305_v15 }
  0x66   : > { %843 = vmatprep.mubr.msk.bf16.mxu0 %vm981_vm0, %v980_v0  ;;  %828 = vmatpush3.bf16.msra.mxu0 %v896_v18 }
  0x67   : > { %829 = vmatprep.subr.bf16.mxu0 %v980_v0 }
  0x6a   : > { %830 = vmatpush3.bf16.msra.mxu0 %v897_v19 }
  0x6b   : > { %831 = vmatprep.subr.bf16.mxu0 %v980_v0 }
  0x6e   : > { %832 = vmatpush3.bf16.msra.mxu0 %v898_v20 }
  0x6f   : > { %833 = vmatprep.subr.bf16.mxu0 %v980_v0 }
  0x72   : > { %834 = vmatpush3.bf16.msra.mxu0 %v899_v21 }
  0x73   : > { %835 = vmatprep.subr.bf16.mxu0 %v980_v0 }
  0x76   : > { %836 = vmatpush3.bf16.msra.mxu0 %v900_v22 }
  0x77   : > { %837 = vmatprep.subr.bf16.mxu0 %v980_v0 }
  0x7a   : > { %838 = vmatpush3.bf16.msra.mxu0 %v901_v23 }
  0x7b   : > { %839 = vmatprep.subr.bf16.mxu0 %v980_v0 }
  0x7e   : > { %840 = vmatpush3.bf16.msra.mxu0 %v902_v32 }
  0x7f   : > { %841 = vmatprep.subr.bf16.mxu0 %v980_v0 }
  0x82   : > { %842 = vmatpush3.bf16.msra.mxu0 %v903_v33 }
 0x138   : > { %v411_v25 = vpop.f32.mrb[0].mxu0 }
 0x139   : > { %v412_v26 = vadd.f32 %v731_v24, %v411_v25  ;;  %v805_v27 = vpop.f32.mrb[1].mxu0 }
 0x13a   : > { %v414_v28 = vpop.f32.mrb[2].mxu0 }
 0x13b   : > { %v417_v29 = vmax.f32 %v412_v26, 0.0  ;;  %v806_v30 = vpop.f32.mrb[3].mxu0 }
 0x13d   : > { %v418_v31 = vpack.c.bf16 %v417_v29, %v417_v29 }
 0x13f   : > { %824 = vmatmul.mubr.bf16.vlgmr.msra.gmra.mrb[0].mxu1 %v418_v31 }
 0x212   : > { %v524_v35 = vpop.f32.mrb[0].mxu1 }
 0x213   : > { %v525_v36 = vadd.f32 %v740_v34, %v524_v35  ;;  %v825_v37 = vpop.f32.mrb[1].mxu1 }
 0x214   : > { %v527_v38 = vpop.f32.mrb[2].mxu1 }
 0x215   : > { %v530_v39 = vmax.f32 %v525_v36, 0.0  ;;  %v826_v40 = vpop.f32.mrb[3].mxu1 }
 0x217   : > { %v531_v41 = vpack.c.bf16 %v530_v39, %v530_v39 }
 0x219   : > { %844 = vmatmul.mubr.bf16.vlgmr.msra.gmra.mrb[4].mxu0 %v531_v41 }
 0x2ec   : > { %v637_v43 = vpop.f32.mrb[4].mxu0 }
 0x2ed   : > { %v638_v44 = vadd.f32 %v749_v42, %v637_v43  ;;  %v845_v45 = vpop.f32.mrb[5].mxu0 }
 0x2ee   : > { %v640_v46 = vpop.f32.mrb[6].mxu0 }
 0x2ef   : > { %v643_v47 = vpack.c.bf16 %v638_v44, %v638_v44  ;;  %v846_v48 = vpop.f32.mrb[7].mxu0 }
 0x2f1   : > { %644 = vst [vmem:[%s303_s18] sm:$0xf] %v643_v47 }
 0x2f2 PF: > { %s19_s24 = sadd.s32 1, %s974_s24  }
 0x2f3   : > { %p16_p9 = scmp.ge.s32.totalorder %s19_s24, 4  }
 0x2f5   :  { %18 = sbr.rel (!%p16_p9) target bundleno = 2 (0x2), region = 87 }
 0x2fc   :  { %664 = vsyncpa [#allocation3], 1 }
 0x2fd   :  { %666 = vsyncpa [#allocation3 + $0x1], 1 }
 0x2fe   :  { %667 = vsyncpa [#allocation5], 1 }

</bundles_post_ra>
